<compile_context>
chip_gen: v6e
topology: v6e:2x2x1
jax: 0.10.0
libtpu: 0.0.40
codegen_flags: <defaults>
</compile_context>

<pallas_src>
import functools

import numpy as np
import jax
import jax.numpy as jnp
from jax import lax
from jax.experimental import pallas as pl
from jax.experimental.pallas import tpu as pltpu

TWO_PI = 2.0 * np.pi
INV_TWO_PI = 1.0 / TWO_PI


def _round_up(n, m):
    return ((n + m - 1) // m) * m


def kuramoto_kernel(drive_ref, state0_ref, whT_ref, out_ref, state_scr, stack_scr):
    """One grid step = one (batch-tile, time-chunk); Tc Kuramoto updates inside."""
    c = pl.program_id(1)                      # time-chunk axis (innermost, "arbitrary")

    @pl.when(c == 0)
    def _():                                  # new batch tile -> load its initial phases
        state_scr[...] = state0_ref[...]

    tc = drive_ref.shape[0]                   # static chunk length
    bt = state_scr.shape[0]                   # static batch-tile rows

    for i in range(tc):                       # static, fully-unrolled time loop
        s = state_scr[...]                    # (Bt, Hp) f32
        cs = jnp.cos(s)
        ss = jnp.sin(s)

        # Stack [cos; sin] into a persistent scratch (no per-step concat temp);
        # cs/ss stay in vregs for the combine below.
        stack_scr[pl.ds(0, bt), :] = cs.astype(stack_scr.dtype)
        stack_scr[pl.ds(bt, bt), :] = ss.astype(stack_scr.dtype)

        # coupling = sin(s)*(cos(s) @ Wh^T) - cos(s)*(sin(s) @ Wh^T)
        # Wh is pre-transposed in the wrapper -> plain (2*Bt,Hp)x(Hp,Hp) contraction.
        prod = jnp.dot(stack_scr[...], whT_ref[...],
                       preferred_element_type=jnp.float32)      # (2*Bt, Hp) f32
        coupling = ss * prod[:bt, :] - cs * prod[bt:, :]

        new_state = coupling + drive_ref[i] + s
        # remainder(x, 2*pi): mul + floor on cheap VPU slots, then clamp so the
        # result lies strictly in [0, 2*pi) like jnp.remainder guarantees.
        wrapped = new_state - jnp.floor(new_state * INV_TWO_PI) * TWO_PI
        wrapped = jnp.where(wrapped >= TWO_PI, wrapped - TWO_PI, wrapped)
        wrapped = jnp.maximum(wrapped, 0.0)

        state_scr[...] = wrapped
        out_ref[i] = wrapped.astype(out_ref.dtype)


@functools.partial(jax.jit, static_argnames=("mxu_bf16",))
def kuramoto_cell_scan(x_seq, state0, wi_w, wi_b, wh, omega, *, mxu_bf16=False):
    """Run T fused Kuramoto steps in a single pallas_call.

    x_seq : (T, B, n_inp)   per-step input drive
    state0: (B, n_hid)      initial phases
    wi_w  : (n_hid, n_inp)  Wi.weight   wi_b: (n_hid,) Wi.bias (zeros if no bias)
    wh    : (n_hid, n_hid)  coupling    omega: (n_hid,)
    returns (T, B, n_hid) per-step phases in [0, 2*pi).
    """
    T, B, n_inp = x_seq.shape
    n_hid = state0.shape[1]
    f32 = jnp.float32

    # ---- Hoisted input drive: one big matmul (M = T*B) instead of T tiny
    # M=B matmuls on the kernel's sequential critical path. bias+omega folded in.
    drive = jnp.einsum(
        "tbi,hi->tbh", x_seq.astype(f32), wi_w.astype(f32),
        precision=lax.Precision.HIGHEST,
    ) + (wi_b.astype(f32) + omega.astype(f32))                 # (T, B, n_hid)

    # ---- Padding to lane/sublane-friendly sizes (exact, see header).
    b_quant = 16 if mxu_bf16 else 8       # bf16 sublane tile is 16 rows
    Bp = _round_up(B, b_quant)
    Hp = _round_up(n_hid, 128)

    # Batch tiling: leading "parallel" grid axis (v7x megacore); one tile here.
    Bt = Bp if Bp <= 128 else 128
    Bp = _round_up(Bp, Bt)
    nb = Bp // Bt

    # Time chunking: amortize per-grid-step pipeline overhead.
    Tc = T if T <= 16 else 16
    Tp = _round_up(T, Tc)
    nc = Tp // Tc

    drive_p = jnp.zeros((Tp, Bp, Hp), f32).at[:T, :B, :n_hid].set(drive)
    state_p = jnp.zeros((Bp, Hp), f32).at[:B, :n_hid].set(state0.astype(f32))
    mxu_dtype = jnp.bfloat16 if mxu_bf16 else f32
    whT_p = (jnp.zeros((Hp, Hp), f32)
             .at[:n_hid, :n_hid].set(wh.astype(f32).T)
             .astype(mxu_dtype))

    # VMEM budget: Wh^T single-buffered + double-buffered drive/out/state0 + scratch.
    # Cap at 48 MiB (safe on v7x's 64 MiB; v5e/v6e could go to ~96-100 MiB).
    w_item = 2 if mxu_bf16 else 4
    footprint = (Hp * Hp * w_item
                 + 2 * Bt * Hp * 4
                 + 2 * 2 * Tc * Bt * Hp * 4
                 + Bt * Hp * 4 + 2 * Bt * Hp * w_item)
    vmem_limit = int(min(max(footprint + (4 << 20), 32 << 20), 48 << 20))

    out = pl.pallas_call(
        kuramoto_kernel,
        out_shape=jax.ShapeDtypeStruct((Tp, Bp, Hp), f32),
        grid=(nb, nc),
        in_specs=[
            pl.BlockSpec((Tc, Bt, Hp), lambda b, c: (c, b, 0)),   # drive chunk (streamed)
            pl.BlockSpec((Bt, Hp), lambda b, c: (b, 0)),          # initial phases per batch tile
            pl.BlockSpec((Hp, Hp), lambda b, c: (0, 0),
                         pipeline_mode=pl.Buffered(1)),           # Wh^T: constant -> single buffer
        ],
        out_specs=pl.BlockSpec((Tc, Bt, Hp), lambda b, c: (c, b, 0)),
        scratch_shapes=[
            pltpu.VMEM((Bt, Hp), f32),            # carried phase state
            pltpu.VMEM((2 * Bt, Hp), mxu_dtype),  # persistent [cos; sin] operand
        ],
        compiler_params=pltpu.CompilerParams(
            dimension_semantics=("parallel", "arbitrary"),  # time carries state
            vmem_limit_bytes=vmem_limit,
        ),
    )(drive_p, state_p, whT_p)

    return out[:T, :B, :n_hid]


def kuramoto_cell_forward(x, state, wi_w, wi_b, wh, omega):
    """Single KuramotoCell.forward step: x (B, n_inp), state (B, n_hid)."""
    return kuramoto_cell_scan(x[None], state, wi_w, wi_b, wh, omega)[0]


# ------------------------------ pure-JAX reference --------------------------

def reference_forward(x, state, wi_w, wi_b, wh, omega):
    """Literal translation of the PyTorch forward (pairwise sin)."""
    diff = state[:, :, None] - state[:, None, :]
    coupling = jnp.sum(wh[None, :, :] * jnp.sin(diff), axis=2)
    drive = jnp.dot(x, wi_w.T, precision=lax.Precision.HIGHEST) + wi_b
    return jnp.remainder(coupling + drive + omega + state, TWO_PI)


def _circular_err(a, b):
    d = np.abs(np.asarray(a, np.float64) - np.asarray(b, np.float64)) % TWO_PI
    return np.minimum(d, TWO_PI - d)


if __name__ == "__main__":
    B, n_inp, n_hid, T = 8, 16, 32, 4

    key = jax.random.PRNGKey(0)
    k_x, k_s, k_ww, k_wb, k_wh, k_om = jax.random.split(key, 6)

    x_seq = jax.random.normal(k_x, (T, B, n_inp), dtype=jnp.float32)
    state = jax.random.uniform(k_s, (B, n_hid), dtype=jnp.float32,
                               minval=0.0, maxval=TWO_PI)

    # Parameter init mirroring __init__ shapes:
    #   Wi: nn.Linear(n_inp, n_hid) -> weight (n_hid, n_inp), bias (n_hid,)
    #   Wh: (n_hid, n_hid) uniform [0,1)   omega: (n_hid,) from `freq`
    bound = 1.0 / np.sqrt(n_inp)
    wi_w = jax.random.uniform(k_ww, (n_hid, n_inp), dtype=jnp.float32,
                              minval=-bound, maxval=bound)
    wi_b = jax.random.uniform(k_wb, (n_hid,), dtype=jnp.float32,
                              minval=-bound, maxval=bound)
    wh = jax.random.uniform(k_wh, (n_hid, n_hid), dtype=jnp.float32,
                            minval=0.0, maxval=1.0)
    omega = jax.random.normal(k_om, (n_hid,), dtype=jnp.float32)

    # Single step == the module's forward. Phases are circular, so compare on
    # the circle (a ~1e-6 pre-mod difference near a 2*pi boundary would
    # otherwise look like a 2*pi error).
    out1 = jax.block_until_ready(
        kuramoto_cell_forward(x_seq[0], state, wi_w, wi_b, wh, omega))
    ref1 = reference_forward(x_seq[0], state, wi_w, wi_b, wh, omega)
    assert _circular_err(out1, ref1).max() < 1e-4, "single-step mismatch"
    o1 = np.asarray(out1)
    assert (o1 >= 0.0).all() and (o1 < TWO_PI).all(), "range [0, 2*pi) violated"

    # T fused steps in one pallas_call (Wh stays VMEM-resident, drive hoisted).
    # Looser bound: the trig-identity rewrite reorders f32 accumulation and the
    # chaotic dynamics amplify per-step rounding; a wiring bug would be O(1).
    outs = jax.block_until_ready(
        kuramoto_cell_scan(x_seq, state, wi_w, wi_b, wh, omega))
    ref_s = state
    for t in range(T):
        ref_s = reference_forward(x_seq[t], ref_s, wi_w, wi_b, wh, omega)
        assert _circular_err(outs[t], ref_s).max() < 2e-2, f"scan mismatch @t={t}"

    # bf16-MXU path smoke test (accuracy intentionally not tightly asserted —
    # operands only; all elementwise math stays f32).
    outs_bf16 = jax.block_until_ready(
        kuramoto_cell_scan(x_seq, state, wi_w, wi_b, wh, omega, mxu_bf16=True))
    ob = np.asarray(outs_bf16)
    assert ob.shape == (T, B, n_hid) and np.isfinite(ob).all(), "bf16 path failed"

    print("KERNEL_OK")
</pallas_src>

<mosaic_0001>
module attributes {stable_mosaic.version = 11 : i64} {
  func.func @kuramoto_kernel(%arg0: i32, %arg1: i32, %arg2: memref<1x8x128xf32, #tpu.memory_space<vmem>>, %arg3: memref<8x128xf32, #tpu.memory_space<vmem>>, %arg4: memref<128x128xf32, #tpu.memory_space<vmem>>, %arg5: memref<1x8x128xf32, #tpu.memory_space<vmem>>, %arg6: memref<8x128xf32, #tpu.memory_space<vmem>>, %arg7: memref<16x128xf32, #tpu.memory_space<vmem>>) attributes {dimension_semantics = [#tpu.dimension_semantics<parallel>, #tpu.dimension_semantics<arbitrary>], iteration_bounds = array<i64: 1, 1>, scalar_prefetch = 0 : i64, scratch_operands = 2 : i64, tpu.core_type = #tpu.core_type<tc>, window_params = [{transform_indices = @transform_0, window_bounds = array<i64: 1, 8, 128>}, {transform_indices = @transform_1, window_bounds = array<i64: 8, 128>}, {pipeline_mode = #tpu.pipeline_mode<synchronous>, transform_indices = @transform_2, window_bounds = array<i64: 128, 128>}, {transform_indices = @transform_3, window_bounds = array<i64: 1, 8, 128>}]} {
    %c0_i32 = arith.constant 0 : i32
    %0 = arith.cmpi eq, %arg1, %c0_i32 : i32
    %1 = arith.extui %0 : i1 to i32
    %c0_i32_0 = arith.constant 0 : i32
    %2 = arith.cmpi ne, %1, %c0_i32_0 : i32
    scf.if %2 {
      %c0_22 = arith.constant 0 : index
      %c0_23 = arith.constant 0 : index
      %37 = vector.load %arg3[%c0_22, %c0_23] : memref<8x128xf32, #tpu.memory_space<vmem>>, vector<8x128xf32>
      %c0_24 = arith.constant 0 : index
      %c0_25 = arith.constant 0 : index
      %38 = vector.load %arg6[%c0_24, %c0_25] : memref<8x128xf32, #tpu.memory_space<vmem>>, vector<8x128xf32>
      tpu.vector_store %arg6[%c0_24, %c0_25], %37 {strides = array<i32>} : memref<8x128xf32, #tpu.memory_space<vmem>>, vector<8x128xf32>,
    } else {
    }
    %c0 = arith.constant 0 : index
    %c0_1 = arith.constant 0 : index
    %3 = vector.load %arg6[%c0, %c0_1] : memref<8x128xf32, #tpu.memory_space<vmem>>, vector<8x128xf32>
    %4 = math.cos %3 : vector<8x128xf32>
    %5 = math.sin %3 : vector<8x128xf32>
    %c0_2 = arith.constant 0 : index
    %c0_3 = arith.constant 0 : index
    %6 = vector.load %arg7[%c0_2, %c0_3] : memref<16x128xf32, #tpu.memory_space<vmem>>, vector<8x128xf32>
    tpu.vector_store %arg7[%c0_2, %c0_3], %4 {strides = array<i32>} : memref<16x128xf32, #tpu.memory_space<vmem>>, vector<8x128xf32>,
    %c8 = arith.constant 8 : index
    %c0_4 = arith.constant 0 : index
    %7 = vector.load %arg7[%c8, %c0_4] : memref<16x128xf32, #tpu.memory_space<vmem>>, vector<8x128xf32>
    tpu.vector_store %arg7[%c8, %c0_4], %5 {strides = array<i32>} : memref<16x128xf32, #tpu.memory_space<vmem>>, vector<8x128xf32>,
    %c0_5 = arith.constant 0 : index
    %c0_6 = arith.constant 0 : index
    %8 = vector.load %arg7[%c0_5, %c0_6] : memref<16x128xf32, #tpu.memory_space<vmem>>, vector<16x128xf32>
    %c0_7 = arith.constant 0 : index
    %c0_8 = arith.constant 0 : index
    %9 = vector.load %arg4[%c0_7, %c0_8] : memref<128x128xf32, #tpu.memory_space<vmem>>, vector<128x128xf32>
    %cst = arith.constant dense<0.000000e+00> : vector<16x128xf32>
    %10 = tpu.matmul %8, %9, %cst {dimension_numbers = #tpu.dot_dimension_numbers<[1], [0], [0], [1], [0, 0, 1, 1], [], []>} : vector<16x128xf32>, vector<128x128xf32>, vector<16x128xf32> -> vector<16x128xf32>
    %11 = vector.extract_strided_slice %10 {offsets = [0, 0], sizes = [8, 128], strides = [1, 1]} : vector<16x128xf32> to vector<8x128xf32>
    %12 = arith.mulf %5, %11 : vector<8x128xf32>
    %13 = vector.extract_strided_slice %10 {offsets = [8, 0], sizes = [8, 128], strides = [1, 1]} : vector<16x128xf32> to vector<8x128xf32>
    %14 = arith.mulf %4, %13 : vector<8x128xf32>
    %15 = arith.subf %12, %14 : vector<8x128xf32>
    %c0_9 = arith.constant 0 : index
    %c0_10 = arith.constant 0 : index
    %c0_11 = arith.constant 0 : index
    %16 = vector.load %arg2[%c0_9, %c0_10, %c0_11] : memref<1x8x128xf32, #tpu.memory_space<vmem>>, vector<1x8x128xf32>
    %17 = vector.shape_cast %16 : vector<1x8x128xf32> to vector<8x128xf32>
    %18 = arith.addf %15, %17 : vector<8x128xf32>
    %19 = arith.addf %18, %3 : vector<8x128xf32>
    %cst_12 = arith.constant 0.159154937 : f32
    %20 = vector.broadcast %cst_12 : f32 to vector<8x128xf32>
    %21 = arith.mulf %19, %20 : vector<8x128xf32>
    %22 = math.floor %21 : vector<8x128xf32>
    %cst_13 = arith.constant 6.28318548 : f32
    %23 = vector.broadcast %cst_13 : f32 to vector<8x128xf32>
    %24 = arith.mulf %22, %23 : vector<8x128xf32>
    %25 = arith.subf %19, %24 : vector<8x128xf32>
    %cst_14 = arith.constant 6.28318548 : f32
    %26 = vector.broadcast %cst_14 : f32 to vector<8x128xf32>
    %27 = arith.cmpf oge, %25, %26 : vector<8x128xf32>
    %cst_15 = arith.constant 6.28318548 : f32
    %28 = vector.broadcast %cst_15 : f32 to vector<8x128xf32>
    %29 = arith.subf %25, %28 : vector<8x128xf32>
    %30 = arith.select %27, %29, %25 : vector<8x128xi1>, vector<8x128xf32>
    %cst_16 = arith.constant 0.000000e+00 : f32
    %31 = vector.broadcast %cst_16 : f32 to vector<8x128xf32>
    %32 = arith.maximumf %30, %31 : vector<8x128xf32>
    %c0_17 = arith.constant 0 : index
    %c0_18 = arith.constant 0 : index
    %33 = vector.load %arg6[%c0_17, %c0_18] : memref<8x128xf32, #tpu.memory_space<vmem>>, vector<8x128xf32>
    tpu.vector_store %arg6[%c0_17, %c0_18], %32 {strides = array<i32>} : memref<8x128xf32, #tpu.memory_space<vmem>>, vector<8x128xf32>,
    %c0_19 = arith.constant 0 : index
    %c0_20 = arith.constant 0 : index
    %c0_21 = arith.constant 0 : index
    %34 = vector.load %arg5[%c0_19, %c0_20, %c0_21] : memref<1x8x128xf32, #tpu.memory_space<vmem>>, vector<1x8x128xf32>
    %35 = vector.shape_cast %34 : vector<1x8x128xf32> to vector<8x128xf32>
    %36 = vector.shape_cast %32 : vector<8x128xf32> to vector<1x8x128xf32>
    tpu.vector_store %arg5[%c0_19, %c0_20, %c0_21], %36 {strides = array<i32>} : memref<1x8x128xf32, #tpu.memory_space<vmem>>, vector<1x8x128xf32>,
    return
  }
  func.func @transform_0(%arg0: i32, %arg1: i32) -> (i32, i32, i32) {
    %c0_i32 = arith.constant 0 : i32
    %c0_i32_0 = arith.constant 0 : i32
    return %arg1, %arg0, %c0_i32 : i32, i32, i32
  }
  func.func @transform_1(%arg0: i32, %arg1: i32) -> (i32, i32) {
    %c0_i32 = arith.constant 0 : i32
    %c0_i32_0 = arith.constant 0 : i32
    return %arg0, %c0_i32 : i32, i32
  }
  func.func @transform_2(%arg0: i32, %arg1: i32) -> (i32, i32) {
    %c0_i32 = arith.constant 0 : i32
    %c0_i32_0 = arith.constant 0 : i32
    %c0_i32_1 = arith.constant 0 : i32
    return %c0_i32, %c0_i32_0 : i32, i32
  }
  func.func @transform_3(%arg0: i32, %arg1: i32) -> (i32, i32, i32) {
    %c0_i32 = arith.constant 0 : i32
    %c0_i32_0 = arith.constant 0 : i32
    return %arg1, %arg0, %c0_i32 : i32, i32, i32
  }
}

</mosaic_0001>

<bundles_post_ra>
// kernel: kuramoto_cell_scan.1
= control target key start
LH: loop header
LB: loop body
LE: loop exit
PB: predicated region body
PF: predicated region fallthrough
CT: control target
= control target key end

     0   :  { %s565_s0 = inlined_call_operand.vmem [shape: f32[1,8,128], index: 0, kind: input, shape index: {}]   ;;  %s566_s1 = inlined_call_operand.vmem [shape: f32[8,128], index: 1, kind: input, shape index: {}]   ;;  %s567_s2 = inlined_call_operand.vmem [shape: f32[128,128], index: 2, kind: input, shape index: {}]   ;;  %s568_s3 = inlined_call_operand.hbm [shape: f32[1,8,128], index: 3, kind: output, shape index: {}]  }
   0x1   :  { %v248_v0 = vld [vmem:[%s567_s2 + $0x78] sm:$0xff]  ;;  %v247_v1 = vld [vmem:[%s567_s2 + $0x70] sm:$0xff]  ;;  %v246_v2 = vld [vmem:[%s567_s2 + $0x68] sm:$0xff] }
   0x2   :  { %381 = vmatprep.subr.mxu0 %v248_v0  ;;  %v245_v3 = vld [vmem:[%s567_s2 + $0x60] sm:$0xff] }
   0x3   :  { %382 = vmatpush3.msra.mxu0 %v248_v0  ;;  %v495_v4 = vld [vmem:[%s566_s1] sm:$0xff] }
   0x4   :  { %383 = vmatprep.subr.mxu0 %v247_v1 }
   0x5   :  { %384 = vmatpush3.msra.mxu0 %v247_v1 }
   0x6   :  { %385 = vmatprep.subr.mxu0 %v246_v2 }
   0x7   :  { %8 = vsyncpa [#allocation5], 0  ;;  %386 = vmatpush3.msra.mxu0 %v246_v2  ;;  %v244_v5 = vld [vmem:[%s567_s2 + $0x58] sm:$0xff]  ;;  %v25_v6 = vand.u32 2139095040, %v495_v4  ;;  %v243_v7 = vld [vmem:[%s567_s2 + $0x50] sm:$0xff]  ;;  %vm24_vm7 = vcmp.lt.s32.totalorder %v495_v4, 0  ;;  %vm114_vm15 = vweird.f32 %v495_v4 }
   0x8   :  { %387 = vmatprep.subr.mxu0 %v245_v3  ;;  %v22_v9 = vand.u32 2147483647, %v495_v4  ;;  %v242_v10 = vld [vmem:[%s567_s2 + $0x48] sm:$0xff]  ;;  %v241_v12 = vld [vmem:[%s567_s2 + $0x40] sm:$0xff]  ;;  %v240_v15 = vld [vmem:[%s567_s2 + $0x38] sm:$0xff]  ;;  %s459_s19 = smov [#allocation4]  }
   0x9   :  { %388 = vmatpush3.msra.mxu0 %v245_v3  ;;  %v26_v8 = vshrl.u32 %v25_v6, 23  ;;  %v239_v17 = vld [vmem:[%s567_s2 + $0x30] sm:$0xff]  ;;  %v238_v21 = vld [vmem:[%s567_s2 + $0x28] sm:$0xff]  ;;  %v453_v23 = vmov 683565275   ;;  %v237_v33 = vld [vmem:[%s567_s2 + $0x20] sm:$0xff] }
   0xa   :  { %389 = vmatprep.subr.mxu0 %v244_v5  ;;  %v29_v14 = vand.u32 8388607, %v22_v9  ;;  %v454_v25 = vmov 2475754826   ;;  %v455_v27 = vmov 2131351028  }
   0xb   :  { %390 = vmatpush3.msra.mxu0 %v244_v5  ;;  %v354_v11 = vadd.s32 4294967169, %v26_v8  ;;  %v456_v29 = vmov 2102212464   ;;  %v457_v31 = vmov 920167782   ;;  %v236_v42 = vld [vmem:[%s567_s2 + $0x18] sm:$0xff] }
   0xc   :  { %391 = vmatprep.subr.mxu0 %v243_v7  ;;  %v30_v19 = vor.u32 8388608, %v29_v14  ;;  %v458_v39 = vmov 1326507024   ;;  %v235_v48 = vld [vmem:[%s567_s2 + $0x10] sm:$0xff]  ;;  %v234_v56 = vld [vmem:[%s567_s2 + $0x8] sm:$0xff]  ;;  %v233_v62 = vld [vmem:[%s567_s2] sm:$0xff] }
   0xd   :  { %392 = vmatpush3.msra.mxu0 %v243_v7  ;;  %v32_v13 = vadd.s32 1, %v354_v11  ;;  %vm23_vm8 = vcmp.le.f32.partialorder %v22_v9, 0.7853982  ;;  %s346_s20 = sshll.u32 %s459_s19, 4  ;;  %s347_s20 = int_to_ptr.vmem [resolvable:$true] %s346_s20 }
   0xe   :  { %393 = vmatprep.subr.mxu0 %v242_v10  ;;  %v70_v41 = vshll.u32 %v30_v19, 8  ;;  %s431_s21 = scalar_lea.vmem %s347_s20, 128  ;;  %p436_p1 = scmp.lt.s32.totalorder %s347_s20, %s347_s20 }
   0xf   :  { %394 = vmatpush3.msra.mxu0 %v242_v10  ;;  %vm33_vm0 = vcmp.gt.s32.totalorder %v32_v13, 0  ;;  %p432_p0 = scmp.ne.s32.totalorder %s347_s20, %s431_s21  ;;  %p437_p2 = scmp.lt.s32.totalorder %s431_s21, %s431_s21 }
  0x10   :  { %395 = vmatprep.subr.mxu0 %v241_v12  ;;  %v34_v16 = vsel %vm33_vm0, %v32_v13, 0 }
  0x11   :  { %396 = vmatpush3.msra.mxu0 %v241_v12  ;;  %v36_v18 = vand.u32 31, %v34_v16  ;;  %v35_v20 = vshrl.u32 %v34_v16, 5  ;;  %p438_p3 = por %p437_p2, %p436_p1 }
  0x12   :  { %397 = vmatprep.subr.mxu0 %v240_v15 }
  0x13   :  { %398 = vmatpush3.msra.mxu0 %v240_v15  ;;  %v37_v22 = vsub.s32 32, %v36_v18  ;;  %v39_v24 = vshll.u32 %v453_v23, %v36_v18  ;;  %v42_v26 = vshll.u32 %v454_v25, %v36_v18  ;;  %v45_v28 = vshll.u32 %v455_v27, %v36_v18  ;;  %p439_p4 = pnand %p438_p3, %p432_p0 }
  0x14   :  { %399 = vmatprep.subr.mxu0 %v239_v17  ;;  %v48_v30 = vshll.u32 %v456_v29, %v36_v18  ;;  %v51_v32 = vshll.u32 %v457_v31, %v36_v18  ;;  %vm54_vm1 = vcmp.lt.s32.totalorder %v35_v20, 1  ;;  %vm57_vm2 = vcmp.lt.s32.totalorder %v35_v20, 4 }
  0x15   :  { %400 = vmatpush3.msra.mxu0 %v239_v17  ;;  %v38_v34 = vshrl.u32 %v453_v23, %v37_v22  ;;  %v40_v35 = vshrl.u32 %v454_v25, %v37_v22  ;;  %v43_v36 = vshrl.u32 %v455_v27, %v37_v22  ;;  %v46_v37 = vshrl.u32 %v456_v29, %v37_v22 }
  0x16   :  { %401 = vmatprep.subr.mxu0 %v238_v21  ;;  %v49_v38 = vshrl.u32 %v457_v31, %v37_v22  ;;  %v52_v40 = vshrl.u32 %v458_v39, %v37_v22  ;;  %vm55_vm3 = vcmp.lt.s32.totalorder %v35_v20, 2  ;;  %vm56_vm4 = vcmp.lt.s32.totalorder %v35_v20, 3 }
  0x17   :  { %402 = vmatpush3.msra.mxu0 %v238_v21  ;;  %v41_v43 = vor.u32 %v40_v35, %v39_v24  ;;  %v44_v44 = vor.u32 %v43_v36, %v42_v26  ;;  %v47_v45 = vor.u32 %v46_v37, %v45_v28 }
  0x18   :  { %403 = vmatprep.subr.mxu0 %v237_v33  ;;  %v50_v46 = vor.u32 %v49_v38, %v48_v30  ;;  %v53_v47 = vor.u32 %v52_v40, %v51_v32 }
  0x19   :  { %404 = vmatpush3.msra.mxu0 %v237_v33  ;;  %v58_v49 = vsel %vm54_vm1, %v38_v34, %v41_v43  ;;  %v59_v50 = vsel %vm57_vm2, %v47_v45, 2102212464  ;;  %v62_v51 = vsel %vm54_vm1, %v41_v43, %v44_v44  ;;  %v66_v52 = vsel %vm54_vm1, %v44_v44, %v47_v45 }
  0x1a   :  { %405 = vmatprep.subr.mxu0 %v236_v42  ;;  %v60_v53 = vsel %vm56_vm4, %v44_v44, %v59_v50  ;;  %v63_v54 = vsel %vm57_vm2, %v50_v46, 920167782  ;;  %v67_v55 = vsel %vm57_vm2, %v53_v47, 1326507024 }
  0x1b   :  { %406 = vmatpush3.msra.mxu0 %v236_v42  ;;  %v64_v57 = vsel %vm56_vm4, %v47_v45, %v63_v54  ;;  %v68_v58 = vsel %vm56_vm4, %v50_v46, %v67_v55  ;;  %v61_v59 = vsel %vm55_vm3, %v58_v49, %v60_v53  ;;  %v327_v54 = vld [vmem:[%s565_s0] sm:$0xff] }
  0x1c   :  { %407 = vmatprep.subr.mxu0 %v235_v48  ;;  %v65_v60 = vsel %vm55_vm3, %v62_v51, %v64_v57  ;;  %v69_v61 = vsel %vm55_vm3, %v66_v52, %v68_v58  ;;  %v77_v3 = vmul.u32 %v70_v41, %v61_v59 }
  0x1d   :  { %408 = vmatpush3.msra.mxu0 %v235_v48  ;;  %v543_v63 = vmul.u32.u64.low %v70_v41, %v69_v61  ;;  %v544_v0 = vmul.u32.u64.high %v70_v41, %v69_v61, %v543_v63  ;;  %v546_v1 = vmul.u32.u64.low %v70_v41, %v65_v60  ;;  %v547_v2 = vmul.u32.u64.high %v70_v41, %v65_v60, %v546_v1 }
  0x1e   :  { %409 = vmatprep.subr.mxu0 %v234_v56 }
  0x1f   :  { %410 = vmatpush3.msra.mxu0 %v234_v56  ;;  %vm79_vm5 = vc.u32 %v544_v0, %v546_v1  ;;  %v80_v5 = vadd.s32 1, %v547_v2  ;;  %v78_v17 = vadd.s32 %v546_v1, %v544_v0 }
  0x20   :  { %411 = vmatprep.subr.mxu0 %v233_v62 }
  0x21   :  { %412 = vmatpush3.msra.mxu0 %v233_v62  ;;  %v81_v6 = vsel %vm79_vm5, %v80_v5, %v547_v2 }
  0x22   :  { %v82_v7 = vadd.s32 %v81_v6, %v77_v3 }
  0x24   :  { %v83_v8 = vadd.s32 536870912, %v82_v7 }
  0x26   :  { %v84_v10 = vshrl.u32 %v83_v8, 30 }
  0x28   :  { %v85_v11 = vshll.u32 %v84_v10, 30  ;;  %v108_v30 = vsub.s32 4, %v84_v10 }
  0x2a   :  { %v86_v12 = vsub.s32 %v82_v7, %v85_v11  ;;  %v109_v33 = vsel %vm24_vm7, %v108_v30, %v84_v10 }
  0x2b   :  { %v111_v35 = vsel %vm23_vm8, 0, %v109_v33 }
  0x2c   :  { %v88_v13 = vsub.s32 0, %v86_v12  ;;  %v218_v36 = vadd.s32 3, %v111_v35  ;;  %v115_v37 = vand.u32 3, %v111_v35 }
  0x2e   :  { %v355_v14 = vmin.u32 %v88_v13, %v86_v12  ;;  %v219_v38 = vand.u32 3, %v218_v36  ;;  %vm120_vm9 = vcmp.eq.s32.totalorder %v115_v37, 2  ;;  %vm117_vm11 = vcmp.eq.s32.totalorder %v115_v37, 0 }
  0x2f   :  { %vm116_vm13 = vcmp.lt.s32.totalorder %v115_v37, 2 }
  0x30   :  { %v90_v15 = vclz %v355_v14  ;;  %vm224_vm10 = vcmp.eq.s32.totalorder %v219_v38, 2  ;;  %vm221_vm12 = vcmp.eq.s32.totalorder %v219_v38, 0  ;;  %vm220_vm14 = vcmp.lt.s32.totalorder %v219_v38, 2 }
  0x32   :  { %v356_v16 = vadd.s32 4294967294, %v90_v15 }
  0x34   :  { %vm357_vm6 = vcmp.lt.s32.totalorder %v356_v16, 0 }
  0x35   :  { %v93_v18 = vsel %vm357_vm6, 0, %v356_v16 }
  0x36   :  { %v94_v19 = vsub.s32 32, %v93_v18  ;;  %v95_v20 = vshll.u32 %v86_v12, %v93_v18  ;;  %v98_v21 = vsub.s32 4294967266, %v93_v18 }
  0x38   :  { %v96_v22 = vshrl.u32 %v78_v17, %v94_v19  ;;  %v99_v23 = vadd.s32 127, %v98_v21 }
  0x3a   :  { %v97_v24 = vor.u32 %v96_v22, %v95_v20  ;;  %v100_v25 = vshll.u32 %v99_v23, 23 }
  0x3c   :  { %v101_v26 = vor.u32 4788187, %v100_v25  ;;  %v104_v27 = vcvt.s32.f32 %v97_v24 }
  0x3e   :  { %v102_v28 = vand.u32 2147483647, %v101_v26 }
  0x40   :  { %v105_v29 = vmul.f32 %v104_v27, %v102_v28 }
  0x42   :  { %v106_v31 = vxor.u32 2147483648, %v105_v29 }
  0x44   :  { %v107_v32 = vsel %vm24_vm7, %v106_v31, %v105_v29 }
  0x45   :  { %v110_v34 = vsel %vm23_vm8, %v495_v4, %v107_v32 }
  0x46   :  { %427 = vcosq.f32 %v110_v34 }
  0x47   :  { %429 = vsinq.f32 %v110_v34 }
  0x53   :  { %v428_v39 = vpop.eup %427 }
  0x54   :  { %v430_v40 = vpop.eup %429  ;;  %v121_v41 = vxor.u32 2147483648, %v428_v39 }
  0x55   :  { %v118_v9 = vxor.u32 2147483648, %v430_v40 }
  0x56   :  { %v122_v42 = vsel %vm120_vm9, %v121_v41, %v430_v40  ;;  %v226_v43 = vsel %vm224_vm10, %v121_v41, %v430_v40 }
  0x57   :  { %v119_v44 = vsel %vm117_vm11, %v428_v39, %v118_v9  ;;  %v223_v45 = vsel %vm221_vm12, %v428_v39, %v118_v9 }
  0x58   :  { %v123_v46 = vsel %vm116_vm13, %v119_v44, %v122_v42  ;;  %v227_v47 = vsel %vm220_vm14, %v223_v45, %v226_v43 }
  0x59   :  { %v124_v48 = vsel %vm114_vm15, nan, %v123_v46  ;;  %v228_v49 = vsel %vm114_vm15, nan, %v227_v47 }
  0x5a   :  { %413 = vmatprep.mubr.f32.mxu0 %v124_v48 }
  0x5b   :  { %414 = vmatmul.mubr.f32.vlgmr.msra.gmra.mxu0 %v228_v49 }
 0x11b   :  { %v415_v50 = vpop.f32.mrf.mxu0 }
 0x11c   :  { %v325_v52 = vmul.f32 %v415_v50, %v124_v48 }
 0x11d   :  { %v315_v51 = vpop.f32.mrf.mxu0 }
 0x11e   :  { %v324_v53 = vmul.f32 %v315_v51, %v228_v49 }
 0x120   :  { %v326_v55 = vsub.f32 %v324_v53, %v325_v52 }
 0x122   :  { %v328_v56 = vadd.f32 %v327_v54, %v326_v55 }
 0x124   :  { %v329_v57 = vadd.f32 %v328_v56, %v495_v4 }
 0x126   :  { %v330_v58 = vmul.f32 0.15915494, %v329_v57 }
 0x128   :  { %v331_v59 = vfloor.f32 %v330_v58 }
 0x12a   :  { %v332_v60 = vmul.f32 6.2831855, %v331_v59 }
 0x12c   :  { %v333_v61 = vsub.f32 %v329_v57, %v332_v60 }
 0x12e   :  { %vm334_vm0 = vcmp.ge.f32.partialorder %v333_v61, 6.2831855  ;;  %v362_v62 = vadd.f32 -6.2831855, %v333_v61 }
 0x130   :  { %v336_v63 = vsel %vm334_vm0, %v362_v62, %v333_v61 }
 0x131   :  { %v337_v0 = vmax.f32 %v336_v63, 0.0 }
 0x133   :  { %339 = vst [vmem:[#allocation4] sm:$0xff] %v337_v0 }
 0x134   :  { %442 = shalt.err (!%p439_p4)
}
 0x135   :  { %349 = dma.vmem_to_hbm [thread:$0]  %s347_s20, 128, %s568_s3, [#allocation5]  }
 0x136   :  { %451 = dma.done.wait [#allocation5], 128  }
 0x137   :  { %452 = vsyncadd [#allocation5], 4294967168 }
 0x138   :  { %353 = vsyncpa [#allocation5], 1 }

</bundles_post_ra>
